<compile_context>
chip_gen: v7x
topology: tpu7x:2x2x1
jax: 0.10.0
libtpu: 0.0.40
codegen_flags: <defaults>
</compile_context>

<pallas_src>
import functools

import jax
import jax.numpy as jnp
from jax.experimental import pallas as pl
from jax.experimental.pallas import tpu as pltpu


_TN_CAP = 4096                    # max flattened (C*W) lanes per grid step
_TB_CAP = 256                     # max batch rows per grid step
_VMEM_LIMIT = 32 * 1024 * 1024    # explicit scoped-VMEM cap (safe on v5e/v6e/v7x)


def _cdiv(a, b):
    return (a + b - 1) // b


def _round_up(a, m):
    return _cdiv(a, m) * m


def _channel_attention_kernel(w1_ref, w2_ref, x_ref, o_ref, sum_ref, max_ref,
                              *, n_true, tn, col_ragged):
    """x_ref block: (TB, TN) native-dtype VMEM tile; w1/w2: (1,) f32 scalars in SMEM.

    Grid axis 0 = batch tiles ("parallel"), axis 1 = reduction over N ("arbitrary").
    sum_ref / max_ref: (TB, 1) f32 VMEM accumulators, reset per batch tile.
    """
    k = pl.program_id(1)
    nk = pl.num_programs(1)

    @pl.when(k == 0)
    def _init():
        sum_ref[...] = jnp.zeros_like(sum_ref)
        max_ref[...] = jnp.full(max_ref.shape, -jnp.inf, dtype=max_ref.dtype)

    x = x_ref[...].astype(jnp.float32)                      # (TB, TN) f32

    if col_ragged:
        # Only the last reduction tile can contain out-of-range columns; keep the
        # steady-state path free of masking work.
        @pl.when(k < nk - 1)
        def _interior():
            sum_ref[...] += jnp.sum(x, axis=1, keepdims=True)
            max_ref[...] = jnp.maximum(max_ref[...],
                                       jnp.max(x, axis=1, keepdims=True))

        @pl.when(k == nk - 1)
        def _edge():
            col = jax.lax.broadcasted_iota(jnp.int32, (1, x.shape[1]), 1) + k * tn
            valid = col < n_true                            # (1, TN) bool
            xs = jnp.where(valid, x, 0.0)                   # garbage cols -> 0 for sum
            xm = jnp.where(valid, x, -jnp.inf)              # garbage cols -> -inf for max
            sum_ref[...] += jnp.sum(xs, axis=1, keepdims=True)
            max_ref[...] = jnp.maximum(max_ref[...],
                                       jnp.max(xm, axis=1, keepdims=True))
    else:
        sum_ref[...] += jnp.sum(x, axis=1, keepdims=True)
        max_ref[...] = jnp.maximum(max_ref[...],
                                   jnp.max(x, axis=1, keepdims=True))

    @pl.when(k == nk - 1)
    def _finalize():
        w1 = w1_ref[0]
        w2 = w2_ref[0]
        avg = sum_ref[...] * (1.0 / float(n_true))          # (TB, 1) true-count mean
        mx = max_ref[...]
        # mlp = Conv2d(1,1,1,bias=False) -> ReLU -> Conv2d(1,1,1,bias=False)
        a = w2 * jnp.maximum(w1 * avg, 0.0)
        m = w2 * jnp.maximum(w1 * mx, 0.0)
        o_ref[...] = jax.nn.sigmoid(a + m).astype(o_ref.dtype)   # (TB, 1) column store


def channel_attention(x, w1, w2):
    """x: (B, C, 1, W) float. w1, w2: (1,) floats (the two 1x1 conv weights).

    Returns (B, 1, 1, 1) float32, identical to the PyTorch forward.
    """
    B, C, H, W = x.shape
    assert H == 1, "ChannelAttention requires H == 1 (Conv2d in_channels=1)."
    N = C * W
    x_flat = x.reshape(B, N)                 # lane-dense, native dtype (no HBM cast pass)

    # ---- column (reduction) tiling -----------------------------------------------
    if N <= _TN_CAP:
        tn, nk, col_ragged = N, 1, False     # full-dim block: no masking needed
    else:
        tn = _TN_CAP                         # multiple of 128
        nk = _cdiv(N, tn)
        col_ragged = (N % tn) != 0

    # ---- batch tiling ---------------------------------------------------------------
    itemsize = jnp.dtype(x.dtype).itemsize
    sub = 8 * max(1, 4 // max(1, itemsize))  # sublane group: 8 (f32), 16 (bf16), 32 (i8)
    if B <= sub:
        tb = B                               # full-dim block
    else:
        # >= 2 batch tiles so the "parallel" axis can shard across v7x's 2 TensorCores.
        tb = min(_TB_CAP, _round_up(_cdiv(B, 2), sub))
    gb = _cdiv(B, tb)

    kernel = functools.partial(_channel_attention_kernel,
                               n_true=N, tn=tn, col_ragged=col_ragged)

    out = pl.pallas_call(
        kernel,
        out_shape=jax.ShapeDtypeStruct((B, 1), jnp.float32),
        grid=(gb, nk),
        in_specs=[
            pl.BlockSpec(memory_space=pltpu.MemorySpace.SMEM),    # w1 scalar
            pl.BlockSpec(memory_space=pltpu.MemorySpace.SMEM),    # w2 scalar
            pl.BlockSpec((tb, tn), lambda b, k: (b, k)),          # (TB, TN) data tile
        ],
        out_specs=pl.BlockSpec((tb, 1), lambda b, k: (b, 0)),     # (TB, 1) column / tile
        scratch_shapes=[
            pltpu.VMEM((tb, 1), jnp.float32),   # running sum
            pltpu.VMEM((tb, 1), jnp.float32),   # running max
        ],
        compiler_params=pltpu.CompilerParams(
            dimension_semantics=("parallel", "arbitrary"),
            vmem_limit_bytes=_VMEM_LIMIT,
        ),
    )(w1.astype(jnp.float32).reshape(1), w2.astype(jnp.float32).reshape(1), x_flat)

    return out.reshape(B, 1, 1, 1)


def _reference(x, w1, w2):
    # Pure-JAX reference mirroring the PyTorch module exactly.
    xp = jnp.transpose(x.astype(jnp.float32), (0, 2, 1, 3))   # (B, H, C, W) ; H == 1
    avg = jnp.mean(xp, axis=(2, 3), keepdims=True)            # (B, 1, 1, 1)
    mx = jnp.max(xp, axis=(2, 3), keepdims=True)
    mlp = lambda t: w2[0] * jnp.maximum(w1[0] * t, 0.0)
    s = jax.nn.sigmoid(mlp(avg) + mlp(mx))
    return jnp.transpose(s, (0, 2, 1, 3))


if __name__ == "__main__":
    key = jax.random.PRNGKey(0)
    kx, k1, k2, kx2 = jax.random.split(key, 4)

    # Small case (single grid step, full-dim blocks).
    B, C, H, W = 2, 4, 1, 16
    x = jax.random.normal(kx, (B, C, H, W), dtype=jnp.float32)
    w1 = jax.random.normal(k1, (1,), dtype=jnp.float32)   # Conv2d(1,1,1) weight (scalar)
    w2 = jax.random.normal(k2, (1,), dtype=jnp.float32)

    out = jax.block_until_ready(channel_attention(x, w1, w2))
    ref = _reference(x, w1, w2)
    assert out.shape == (B, 1, 1, 1)
    if not jnp.allclose(out, ref, atol=1e-5, rtol=1e-5):
        raise AssertionError("Pallas kernel does not match reference (small case)")

    # Second case exercising batch tiling (gb > 1, ragged batch edge), lane tiling
    # (C*W > TN cap, ragged last reduction tile) and the -inf edge masking
    # (all-negative data would expose any zero leakage into the max).
    B2, C2, H2, W2 = 20, 3, 1, 3100
    x2 = -jnp.abs(jax.random.normal(kx2, (B2, C2, H2, W2), dtype=jnp.float32)) - 0.1
    out2 = jax.block_until_ready(channel_attention(x2, w1, w2))
    ref2 = _reference(x2, w1, w2)
    if not jnp.allclose(out2, ref2, atol=1e-5, rtol=1e-5):
        raise AssertionError("Pallas kernel does not match reference (tiled case)")

    print("KERNEL_OK")
</pallas_src>

<mosaic_0001>
module attributes {stable_mosaic.version = 11 : i64} {
  func.func @_channel_attention_kernel(%arg0: i32, %arg1: i32, %arg2: memref<1xf32, #tpu.memory_space<smem>>, %arg3: memref<1xf32, #tpu.memory_space<smem>>, %arg4: memref<2x64xf32, #tpu.memory_space<vmem>>, %arg5: memref<2x1xf32, #tpu.memory_space<vmem>>, %arg6: memref<2x1xf32, #tpu.memory_space<vmem>>, %arg7: memref<2x1xf32, #tpu.memory_space<vmem>>) attributes {dimension_semantics = [#tpu.dimension_semantics<parallel>, #tpu.dimension_semantics<arbitrary>], iteration_bounds = array<i64: 1, 1>, scalar_prefetch = 0 : i64, scratch_operands = 2 : i64, tpu.core_type = #tpu.core_type<tc>, window_params = [{transform_indices = @transform_0, window_bounds = array<i64: 1>}, {transform_indices = @transform_1, window_bounds = array<i64: 1>}, {transform_indices = @transform_2, window_bounds = array<i64: 2, 64>}, {transform_indices = @transform_3, window_bounds = array<i64: 2, 1>}]} {
    %c0_i32 = arith.constant 0 : i32
    %0 = arith.cmpi eq, %arg1, %c0_i32 : i32
    %1 = arith.extui %0 : i1 to i32
    %c0_i32_0 = arith.constant 0 : i32
    %2 = arith.cmpi ne, %1, %c0_i32_0 : i32
    scf.if %2 {
      %cst_13 = arith.constant 0.000000e+00 : f32
      %17 = vector.broadcast %cst_13 : f32 to vector<2x1xf32>
      %c0_14 = arith.constant 0 : index
      %c0_15 = arith.constant 0 : index
      %18 = vector.load %arg6[%c0_14, %c0_15] : memref<2x1xf32, #tpu.memory_space<vmem>>, vector<2x1xf32>
      tpu.vector_store %arg6[%c0_14, %c0_15], %17 {strides = array<i32>} : memref<2x1xf32, #tpu.memory_space<vmem>>, vector<2x1xf32>,
      %cst_16 = arith.constant 0xFF800000 : f32
      %19 = vector.broadcast %cst_16 : f32 to vector<2x1xf32>
      %c0_17 = arith.constant 0 : index
      %c0_18 = arith.constant 0 : index
      %20 = vector.load %arg7[%c0_17, %c0_18] : memref<2x1xf32, #tpu.memory_space<vmem>>, vector<2x1xf32>
      tpu.vector_store %arg7[%c0_17, %c0_18], %19 {strides = array<i32>} : memref<2x1xf32, #tpu.memory_space<vmem>>, vector<2x1xf32>,
    } else {
    }
    %c0 = arith.constant 0 : index
    %c0_1 = arith.constant 0 : index
    %3 = vector.load %arg4[%c0, %c0_1] : memref<2x64xf32, #tpu.memory_space<vmem>>, vector<2x64xf32>
    %c0_2 = arith.constant 0 : index
    %c0_3 = arith.constant 0 : index
    %4 = vector.load %arg6[%c0_2, %c0_3] : memref<2x1xf32, #tpu.memory_space<vmem>>, vector<2x1xf32>
    %cst = arith.constant dense<0.000000e+00> : vector<2xf32>
    %5 = vector.multi_reduction <add>, %3, %cst [1] : vector<2x64xf32> to vector<2xf32>
    %6 = vector.shape_cast %5 : vector<2xf32> to vector<2x1xf32>
    %7 = arith.addf %4, %6 : vector<2x1xf32>
    %c0_4 = arith.constant 0 : index
    %c0_5 = arith.constant 0 : index
    %8 = vector.load %arg6[%c0_4, %c0_5] : memref<2x1xf32, #tpu.memory_space<vmem>>, vector<2x1xf32>
    tpu.vector_store %arg6[%c0_4, %c0_5], %7 {strides = array<i32>} : memref<2x1xf32, #tpu.memory_space<vmem>>, vector<2x1xf32>,
    %c0_6 = arith.constant 0 : index
    %c0_7 = arith.constant 0 : index
    %9 = vector.load %arg7[%c0_6, %c0_7] : memref<2x1xf32, #tpu.memory_space<vmem>>, vector<2x1xf32>
    %cst_8 = arith.constant dense<0xFF800000> : vector<2xf32>
    %10 = vector.multi_reduction <maximumf>, %3, %cst_8 [1] : vector<2x64xf32> to vector<2xf32>
    %11 = vector.shape_cast %10 : vector<2xf32> to vector<2x1xf32>
    %12 = arith.maximumf %9, %11 : vector<2x1xf32>
    %c0_9 = arith.constant 0 : index
    %c0_10 = arith.constant 0 : index
    %13 = vector.load %arg7[%c0_9, %c0_10] : memref<2x1xf32, #tpu.memory_space<vmem>>, vector<2x1xf32>
    tpu.vector_store %arg7[%c0_9, %c0_10], %12 {strides = array<i32>} : memref<2x1xf32, #tpu.memory_space<vmem>>, vector<2x1xf32>,
    %c0_i32_11 = arith.constant 0 : i32
    %14 = arith.cmpi eq, %arg1, %c0_i32_11 : i32
    %15 = arith.extui %14 : i1 to i32
    %c0_i32_12 = arith.constant 0 : i32
    %16 = arith.cmpi ne, %15, %c0_i32_12 : i32
    scf.if %16 {
      %c0_13 = arith.constant 0 : index
      %17 = memref.load %arg2[%c0_13] : memref<1xf32, #tpu.memory_space<smem>>
      %c0_14 = arith.constant 0 : index
      %18 = memref.load %arg3[%c0_14] : memref<1xf32, #tpu.memory_space<smem>>
      %c0_15 = arith.constant 0 : index
      %c0_16 = arith.constant 0 : index
      %19 = vector.load %arg6[%c0_15, %c0_16] : memref<2x1xf32, #tpu.memory_space<vmem>>, vector<2x1xf32>
      %cst_17 = arith.constant 1.562500e-02 : f32
      %20 = vector.broadcast %cst_17 : f32 to vector<2x1xf32>
      %21 = arith.mulf %19, %20 : vector<2x1xf32>
      %c0_18 = arith.constant 0 : index
      %c0_19 = arith.constant 0 : index
      %22 = vector.load %arg7[%c0_18, %c0_19] : memref<2x1xf32, #tpu.memory_space<vmem>>, vector<2x1xf32>
      %23 = vector.broadcast %17 : f32 to vector<2x1xf32>
      %24 = arith.mulf %23, %21 : vector<2x1xf32>
      %cst_20 = arith.constant 0.000000e+00 : f32
      %25 = vector.broadcast %cst_20 : f32 to vector<2x1xf32>
      %26 = arith.maximumf %24, %25 : vector<2x1xf32>
      %27 = vector.broadcast %18 : f32 to vector<2x1xf32>
      %28 = arith.mulf %27, %26 : vector<2x1xf32>
      %29 = vector.broadcast %17 : f32 to vector<2x1xf32>
      %30 = arith.mulf %29, %22 : vector<2x1xf32>
      %cst_21 = arith.constant 0.000000e+00 : f32
      %31 = vector.broadcast %cst_21 : f32 to vector<2x1xf32>
      %32 = arith.maximumf %30, %31 : vector<2x1xf32>
      %33 = vector.broadcast %18 : f32 to vector<2x1xf32>
      %34 = arith.mulf %33, %32 : vector<2x1xf32>
      %35 = arith.addf %28, %34 : vector<2x1xf32>
      %36 = arith.negf %35 : vector<2x1xf32>
      %37 = math.exp %36 : vector<2x1xf32>
      %cst_22 = arith.constant 1.000000e+00 : f32
      %38 = vector.broadcast %cst_22 : f32 to vector<2x1xf32>
      %39 = arith.addf %38, %37 : vector<2x1xf32>
      %40 = arith.divf %38, %39 : vector<2x1xf32>
      %c0_23 = arith.constant 0 : index
      %c0_24 = arith.constant 0 : index
      %41 = vector.load %arg5[%c0_23, %c0_24] : memref<2x1xf32, #tpu.memory_space<vmem>>, vector<2x1xf32>
      tpu.vector_store %arg5[%c0_23, %c0_24], %40 {strides = array<i32>} : memref<2x1xf32, #tpu.memory_space<vmem>>, vector<2x1xf32>,
    } else {
    }
    return
  }
  func.func @transform_0(%arg0: i32, %arg1: i32) -> i32 {
    %c0_i32 = arith.constant 0 : i32
    %c0_i32_0 = arith.constant 0 : i32
    return %c0_i32 : i32
  }
  func.func @transform_1(%arg0: i32, %arg1: i32) -> i32 {
    %c0_i32 = arith.constant 0 : i32
    %c0_i32_0 = arith.constant 0 : i32
    return %c0_i32 : i32
  }
  func.func @transform_2(%arg0: i32, %arg1: i32) -> (i32, i32) {
    %c0_i32 = arith.constant 0 : i32
    return %arg0, %arg1 : i32, i32
  }
  func.func @transform_3(%arg0: i32, %arg1: i32) -> (i32, i32) {
    %c0_i32 = arith.constant 0 : i32
    %c0_i32_0 = arith.constant 0 : i32
    return %arg0, %c0_i32 : i32, i32
  }
}

</mosaic_0001>

<bundles_post_ra>
// kernel: tpu_custom_call.1
= control target key start
LH: loop header
LB: loop body
LE: loop exit
PB: predicated region body
PF: predicated region fallthrough
CT: control target
= control target key end

     0   :  { %vm25_vm0 = vcmask 517120   ;;  %vm20_vm1 = vcmask 1024   ;;  %v73_v1 = vmov 0.0   ;;  %v74_v4 = vmov -inf   ;;  %s112_s2 = inlined_call_operand.vmem [shape: f32[2,64], index: 2, kind: input, shape index: {}]   ;;  %s113_s0 = inlined_call_operand.<no memory space> [shape: f32[1], index: 0, kind: input, shape index: {}]   ;;  %s114_s1 = inlined_call_operand.<no memory space> [shape: f32[1], index: 1, kind: input, shape index: {}]   ;;  %s115_s3 = inlined_call_operand.vmem [shape: f32[2,1], index: 3, kind: output, shape index: {}]  }
   0x1   :  { %v23_v0 = vld [vmem:[%s112_s2] sm:$0x3]  ;;  %21 = vst.msk [vmem:[#allocation2] sm:$0x3] %vm20_vm1, %v73_v1  ;;  %22 = vst.msk [vmem:[#allocation3] sm:$0x3] %vm20_vm1, %v74_v4  ;;  %v46_v12 = vstv %s113_s0  ;;  %v49_v18 = vstv %s114_s1 }
   0x2   :  { %v26_v2 = vsel %vm25_vm0, %v23_v0, 0.0  ;;  %v33_v3 = vsel %vm25_vm0, %v23_v0, -inf }
   0x3   :  { %27 = vadd.xlane.f32.xlu0 %v26_v2 }
   0x7   :  { %34 = vmax.xlane.f32.xlu0 %v33_v3 }
   0x8   :  { %v24_v5 = vld [vmem:[#allocation2] sm:$0x3]  ;;  %v32_v8 = vld [vmem:[#allocation3] sm:$0x3] }
  0x90   :  { %v28_v6 = vpop.xlane.xlu0 %27 }
  0x91   :  { %v29_v7 = vadd.f32 %v28_v6, %v24_v5 }
  0x93   :  { %31 = vst.msk [vmem:[#allocation2] sm:$0x3] %vm20_vm1, %v29_v7 }
  0x94   :  { %v35_v9 = vpop.xlane.xlu0 %34 }
  0x95   :  { %v36_v10 = vmax.f32 %v32_v8, %v35_v9 }
  0x97   :  { %37 = vst.msk [vmem:[#allocation3] sm:$0x3] %vm20_vm1, %v36_v10 }
  0x9a   :  { %v43_v11 = vld [vmem:[#allocation2] sm:$0x3] }
  0x9b   :  { %v44_v13 = vmul.f32 0.015625, %v43_v11 }
  0x9d   :  { %v47_v14 = vmul.f32 %v46_v12, %v44_v13 }
  0x9e   :  { %v45_v15 = vld [vmem:[#allocation3] sm:$0x3] }
  0x9f   :  { %v48_v16 = vmax.f32 %v47_v14, 0.0  ;;  %v51_v17 = vmul.f32 %v46_v12, %v45_v15 }
  0xa1   :  { %v52_v19 = vmax.f32 %v51_v17, 0.0  ;;  %v50_v20 = vmul.f32 %v49_v18, %v48_v16 }
  0xa3   :  { %v53_v21 = vmul.f32 %v52_v19, %v49_v18 }
  0xa5   :  { %v54_v22 = vadd.f32 %v53_v21, %v50_v20 }
  0xa7   :  { %v66_v23 = vmul.f32 -1.442695, %v54_v22 }
  0xa9   :  { %69 = vpow2.f32 %v66_v23 }
  0xb3   :  { %v70_v24 = vpop.eup %69 }
  0xb4   :  { %v58_v25 = vadd.f32 1.0, %v70_v24 }
  0xb6   :  { %71 = vrcp.f32 %v58_v25 }
  0xc0   :  { %v72_v26 = vpop.eup %71 }
  0xc1   :  { %61 = vst.msk [vmem:[%s115_s3] sm:$0x3] %vm20_vm1, %v72_v26 }

</bundles_post_ra>
